<compile_context>
chip_gen: v5e
topology: v5e:2x2
jax: 0.10.0
libtpu: 0.0.40
codegen_flags: <defaults>
</compile_context>

<pallas_src>
import math

import jax
import jax.numpy as jnp
from jax.experimental import pallas as pl
from jax.experimental.pallas import tpu as pltpu


# ---------------------------------------------------------------------------
# Kernel
# ---------------------------------------------------------------------------
def _make_attention_kernel(num_heads: int, head_size: int, has_mask: bool):
    NH, HS = num_heads, head_size
    NHS = NH * HS

    def kernel(*refs):
        if has_mask:
            (x_ref,      # (1, TQ, H)        query-tile rows of x, f32
             kT_ref,     # (1, NH, HS, S)    per-head K^T, bf16 (pre-cast)
             v_ref,      # (1, NH, S, HS)    per-head V,   bf16 (pre-cast)
             wq_ref,     # (H, NHS)          bf16, 1/sqrt(HS) folded in
             bq_ref,     # (1, NHS)          f32,  1/sqrt(HS) folded in
             wo_ref,     # (NHS, H)          bf16
             bo_ref,     # (1, H)            f32
             mask_ref,   # (1, 1, 1, S)      f32 additive attention mask
             out_ref,    # (1, TQ, H)
             q_scr,      # (NH, TQ, HS)      bf16 scratch: per-head Q staging
             comb_scr,   # (TQ, NHS)         bf16 scratch: head reassembly
             ) = refs
        else:
            (x_ref, kT_ref, v_ref, wq_ref, bq_ref, wo_ref, bo_ref,
             out_ref, q_scr, comb_scr) = refs
            mask_ref = None

        # ---- Q projection for this query tile (scale & bias pre-folded). ----
        xq = x_ref[0].astype(jnp.bfloat16)                               # (TQ, H)
        q = jnp.dot(xq, wq_ref[...],
                    preferred_element_type=jnp.float32) + bq_ref[...]    # (TQ, NHS) f32
        q = q.astype(jnp.bfloat16)
        # Per-head staging via static slice copies (no 3-D transpose).
        # TODO(synk): with HS=64 the odd-head source slices start mid-vreg
        # (lane 64) -> masked stores; a pair-width staging layout would make
        # these unmasked, at the cost of a blockier score einsum.
        for h in range(NH):
            q_scr[h] = q[:, h * HS:(h + 1) * HS]

        # ---- All heads at once: scores, f32 softmax, context. ----
        # K arrives pre-transposed as (NH, HS, S): natural (K, N) MXU operand,
        # no per-tile K relayout, lane dim = S (lane-dense).
        scores = jnp.einsum(
            "hqd,hdk->hqk", q_scr[...], kT_ref[0],
            preferred_element_type=jnp.float32,
        )                                                                # (NH, TQ, S) f32
        if has_mask:
            scores = scores + mask_ref[...].reshape(1, 1, -1)            # bcast heads/queries

        m = jnp.max(scores, axis=-1, keepdims=True)
        e = jnp.exp(scores - m)
        denom = jnp.sum(e, axis=-1, keepdims=True)
        probs = e * pl.reciprocal(denom, approx=True)                    # EUP reciprocal

        ctx = jnp.einsum(
            "hqk,hkd->hqd", probs.astype(jnp.bfloat16), v_ref[0],
            preferred_element_type=jnp.float32,
        )                                                                # (NH, TQ, HS) f32
        # TODO(synk): for S > 512 or TQ = 256 switch to a flash-style online
        # softmax over key tiles instead of materializing (NH, TQ, S) temps.

        # ---- Reassemble heads (static slice copies) and output projection. ----
        for h in range(NH):
            comb_scr[:, h * HS:(h + 1) * HS] = ctx[h].astype(jnp.bfloat16)
        out = jnp.dot(comb_scr[...], wo_ref[...],
                      preferred_element_type=jnp.float32) + bo_ref[...]  # (TQ, H) f32
        out_ref[0] = out.astype(out_ref.dtype)

    return kernel


# ---------------------------------------------------------------------------
# Wrapper
# ---------------------------------------------------------------------------
def bert_self_attention(x, params, additive_attention_mask=None,
                        *, num_heads, head_size, q_tile=None):
    """x: (B, S, H) float32. Returns (B, S, H) float32."""
    B, S, H = x.shape
    NH, HS = num_heads, head_size
    NHS = NH * HS

    if q_tile is None:
        # 128 matches the v5e MXU and keeps (NH, TQ, S) score temps small; on
        # v6e (128 MiB VMEM) q_tile=256 is worth trying when S % 256 == 0.
        q_tile = 128 if S % 128 == 0 else S
    assert S % q_tile == 0, "sequence length must be divisible by the query tile"
    num_q_tiles = S // q_tile

    inv_scale = 1.0 / math.sqrt(HS)

    # PyTorch nn.Linear stores (out, in): transpose to (in, out).  Fold the
    # 1/sqrt(head_size) attention scale into Wq/bq (free: already touched
    # here).  MXU operands go to bf16; biases stay f32 (added to f32 accums).
    wq = (params["wq"].T * inv_scale).astype(jnp.bfloat16)
    bq = (params["bq"] * inv_scale).reshape(1, NHS).astype(jnp.float32)
    wo = params["wo"].T.astype(jnp.bfloat16)
    bo = params["bo"].reshape(1, H).astype(jnp.float32)

    # ---- Hoisted fused K/V projection: ONE XLA GEMM + per-head relayout. ----
    # Runs once per call at near-peak MXU instead of inside the qt==0 grid
    # step (removes the pipeline bubble and the cross-tile scratch dependency,
    # which in turn lets both grid axes be "parallel").
    wkv = jnp.concatenate([params["wk"].T, params["wv"].T], axis=1).astype(jnp.bfloat16)
    bkv = jnp.concatenate([params["bk"], params["bv"]]).reshape(1, 1, 2 * NHS).astype(jnp.float32)
    kv = jnp.einsum("bsc,cf->bsf", x.astype(jnp.bfloat16), wkv,
                    preferred_element_type=jnp.float32) + bkv            # (B, S, 2*NHS) f32
    k = kv[:, :, :NHS].reshape(B, S, NH, HS)
    v = kv[:, :, NHS:].reshape(B, S, NH, HS)
    # K stored transposed per head (lane dim = S); both cast to bf16 ONCE so
    # the kernel never re-casts K/V per query tile.
    kT = jnp.transpose(k, (0, 2, 3, 1)).astype(jnp.bfloat16)             # (B, NH, HS, S)
    vh = jnp.transpose(v, (0, 2, 1, 3)).astype(jnp.bfloat16)             # (B, NH, S, HS)

    has_mask = additive_attention_mask is not None

    inputs = [x, kT, vh, wq, bq, wo, bo]
    in_specs = [
        pl.BlockSpec((1, q_tile, H), lambda b, t: (b, t, 0)),            # x, query tile only
        pl.BlockSpec((1, NH, HS, S), lambda b, t: (b, 0, 0, 0)),         # K^T (per batch, reused)
        pl.BlockSpec((1, NH, S, HS), lambda b, t: (b, 0, 0, 0)),         # V   (per batch, reused)
        pl.BlockSpec((H, NHS), lambda b, t: (0, 0)),                     # wq (scaled)
        pl.BlockSpec((1, NHS), lambda b, t: (0, 0)),                     # bq (scaled)
        pl.BlockSpec((NHS, H), lambda b, t: (0, 0)),                     # wo
        pl.BlockSpec((1, H), lambda b, t: (0, 0)),                       # bo
    ]
    if has_mask:
        inputs.append(additive_attention_mask.astype(jnp.float32))
        in_specs.append(pl.BlockSpec((1, 1, 1, S), lambda b, t: (b, 0, 0, 0)))

    kernel = _make_attention_kernel(NH, HS, has_mask)

    return pl.pallas_call(
        kernel,
        out_shape=jax.ShapeDtypeStruct((B, S, H), jnp.float32),
        grid=(B, num_q_tiles),
        in_specs=in_specs,
        out_specs=pl.BlockSpec((1, q_tile, H), lambda b, t: (b, t, 0)),
        scratch_shapes=[
            pltpu.VMEM((NH, q_tile, HS), jnp.bfloat16),   # per-head Q staging
            pltpu.VMEM((q_tile, NHS), jnp.bfloat16),      # head reassembly
        ],
        compiler_params=pltpu.CompilerParams(
            # No state carried across grid steps (K/V are proper inputs now),
            # so both axes may be split across TensorCores on v7x megacore.
            dimension_semantics=("parallel", "parallel"),
            # Trimmed budget: lifts v5e's 16 MiB scoped default; BERT-base
            # working set (~25 MiB incl. softmax temps) fits with headroom
            # under v7x's 64 MiB physical VMEM.
            vmem_limit_bytes=40 * 1024 * 1024,
        ),
    )(*inputs)


# ---------------------------------------------------------------------------
# Pure-JAX reference (mirrors the PyTorch module exactly, f32 throughout)
# ---------------------------------------------------------------------------
def bert_self_attention_ref(x, params, additive_attention_mask,
                            *, num_heads, head_size):
    B, S, H = x.shape
    q = x @ params["wq"].T + params["bq"]
    k = x @ params["wk"].T + params["bk"]
    v = x @ params["wv"].T + params["bv"]
    q = q.reshape(B, S, num_heads, head_size).transpose(0, 2, 1, 3)
    k = k.reshape(B, S, num_heads, head_size).transpose(0, 2, 1, 3)
    v = v.reshape(B, S, num_heads, head_size).transpose(0, 2, 1, 3)
    scores = jnp.einsum("bhqd,bhkd->bhqk", q, k) / math.sqrt(head_size)
    if additive_attention_mask is not None:
        scores = scores + additive_attention_mask
    probs = jax.nn.softmax(scores, axis=-1)
    combined = jnp.einsum("bhqk,bhkd->bhqd", probs, v)
    combined = combined.transpose(0, 2, 1, 3).reshape(B, S, num_heads * head_size)
    return combined @ params["wo"].T + params["bo"]


# ---------------------------------------------------------------------------
# Main
# ---------------------------------------------------------------------------
if __name__ == "__main__":
    # Small BertConfig-consistent shapes: hidden=32, heads=4, head_size=8.
    B, S, H = 2, 8, 32
    NUM_HEADS, HEAD_SIZE = 4, 8
    NHS = NUM_HEADS * HEAD_SIZE

    key = jax.random.PRNGKey(0)
    keys = jax.random.split(key, 10)

    # Deterministic synthetic parameters (PyTorch nn.Linear convention: (out, in)).
    scale = 0.02
    params = {
        "wq": scale * jax.random.normal(keys[0], (NHS, H), jnp.float32),
        "bq": scale * jax.random.normal(keys[1], (NHS,), jnp.float32),
        "wk": scale * jax.random.normal(keys[2], (NHS, H), jnp.float32),
        "bk": scale * jax.random.normal(keys[3], (NHS,), jnp.float32),
        "wv": scale * jax.random.normal(keys[4], (NHS, H), jnp.float32),
        "bv": scale * jax.random.normal(keys[5], (NHS,), jnp.float32),
        "wo": scale * jax.random.normal(keys[6], (H, NHS), jnp.float32),
        "bo": scale * jax.random.normal(keys[7], (H,), jnp.float32),
    }

    x = jax.random.normal(keys[8], (B, S, H), jnp.float32)

    # Additive mask: last two key positions of batch 1 are "padding".
    mask = jnp.zeros((B, 1, 1, S), jnp.float32)
    mask = mask.at[1, 0, 0, -2:].set(-1e9)

    # Masked path.
    out = bert_self_attention(
        x, params, mask, num_heads=NUM_HEADS, head_size=HEAD_SIZE
    )
    out = jax.block_until_ready(out)
    ref = bert_self_attention_ref(
        x, params, mask, num_heads=NUM_HEADS, head_size=HEAD_SIZE
    )
    assert out.shape == (B, S, H)
    # Tolerance reflects bf16 MXU matmuls + the approximate softmax reciprocal
    # vs. the f32 reference.  TODO(synk): re-validate the tolerance at
    # production shapes (H=768, S=512) where accumulation depth is much larger.
    max_err = float(jnp.max(jnp.abs(out - ref)))
    assert max_err < 2e-3, max_err

    # Mask-free fast path (no mask DMA / no mask add compiled in).
    out_nm = bert_self_attention(
        x, params, None, num_heads=NUM_HEADS, head_size=HEAD_SIZE
    )
    out_nm = jax.block_until_ready(out_nm)
    ref_nm = bert_self_attention_ref(
        x, params, None, num_heads=NUM_HEADS, head_size=HEAD_SIZE
    )
    max_err_nm = float(jnp.max(jnp.abs(out_nm - ref_nm)))
    assert max_err_nm < 2e-3, max_err_nm

    print("KERNEL_OK")
</pallas_src>

<mosaic_0001>
module attributes {stable_mosaic.version = 11 : i64} {
  func.func @kernel(%arg0: i32, %arg1: i32, %arg2: memref<1x8x32xf32, #tpu.memory_space<vmem>>, %arg3: memref<1x4x8x8xbf16, #tpu.memory_space<vmem>>, %arg4: memref<1x4x8x8xbf16, #tpu.memory_space<vmem>>, %arg5: memref<32x32xbf16, #tpu.memory_space<vmem>>, %arg6: memref<1x32xf32, #tpu.memory_space<vmem>>, %arg7: memref<32x32xbf16, #tpu.memory_space<vmem>>, %arg8: memref<1x32xf32, #tpu.memory_space<vmem>>, %arg9: memref<1x1x1x8xf32, #tpu.memory_space<vmem>>, %arg10: memref<1x8x32xf32, #tpu.memory_space<vmem>>, %arg11: memref<4x8x8xbf16, #tpu.memory_space<vmem>>, %arg12: memref<8x32xbf16, #tpu.memory_space<vmem>>) attributes {dimension_semantics = [#tpu.dimension_semantics<parallel>, #tpu.dimension_semantics<parallel>], iteration_bounds = array<i64: 2, 1>, scalar_prefetch = 0 : i64, scratch_operands = 2 : i64, tpu.core_type = #tpu.core_type<tc>, window_params = [{transform_indices = @transform_0, window_bounds = array<i64: 1, 8, 32>}, {transform_indices = @transform_1, window_bounds = array<i64: 1, 4, 8, 8>}, {transform_indices = @transform_2, window_bounds = array<i64: 1, 4, 8, 8>}, {pipeline_mode = #tpu.pipeline_mode<synchronous>, transform_indices = @transform_3, window_bounds = array<i64: 32, 32>}, {pipeline_mode = #tpu.pipeline_mode<synchronous>, transform_indices = @transform_4, window_bounds = array<i64: 1, 32>}, {pipeline_mode = #tpu.pipeline_mode<synchronous>, transform_indices = @transform_5, window_bounds = array<i64: 32, 32>}, {pipeline_mode = #tpu.pipeline_mode<synchronous>, transform_indices = @transform_6, window_bounds = array<i64: 1, 32>}, {transform_indices = @transform_7, window_bounds = array<i64: 1, 1, 1, 8>}, {transform_indices = @transform_8, window_bounds = array<i64: 1, 8, 32>}]} {
    %c0 = arith.constant 0 : index
    %c0_0 = arith.constant 0 : index
    %c0_1 = arith.constant 0 : index
    %0 = vector.load %arg2[%c0, %c0_0, %c0_1] : memref<1x8x32xf32, #tpu.memory_space<vmem>>, vector<1x8x32xf32>
    %1 = vector.shape_cast %0 : vector<1x8x32xf32> to vector<8x32xf32>
    %2 = arith.truncf %1 : vector<8x32xf32> to vector<8x32xbf16>
    %c0_2 = arith.constant 0 : index
    %c0_3 = arith.constant 0 : index
    %3 = vector.load %arg5[%c0_2, %c0_3] : memref<32x32xbf16, #tpu.memory_space<vmem>>, vector<32x32xbf16>
    %cst = arith.constant dense<0.000000e+00> : vector<8x32xf32>
    %4 = tpu.matmul %2, %3, %cst {dimension_numbers = #tpu.dot_dimension_numbers<[1], [0], [0], [1], [0, 0, 1, 1], [], []>} : vector<8x32xbf16>, vector<32x32xbf16>, vector<8x32xf32> -> vector<8x32xf32>
    %c0_4 = arith.constant 0 : index
    %c0_5 = arith.constant 0 : index
    %5 = vector.load %arg6[%c0_4, %c0_5] : memref<1x32xf32, #tpu.memory_space<vmem>>, vector<1x32xf32>
    %6 = vector.broadcast %5 : vector<1x32xf32> to vector<8x32xf32>
    %7 = arith.addf %4, %6 : vector<8x32xf32>
    %8 = arith.truncf %7 : vector<8x32xf32> to vector<8x32xbf16>
    %9 = vector.extract_strided_slice %8 {offsets = [0, 0], sizes = [8, 8], strides = [1, 1]} : vector<8x32xbf16> to vector<8x8xbf16>
    %c0_6 = arith.constant 0 : index
    %c0_7 = arith.constant 0 : index
    %c0_8 = arith.constant 0 : index
    %10 = vector.load %arg11[%c0_6, %c0_7, %c0_8] : memref<4x8x8xbf16, #tpu.memory_space<vmem>>, vector<1x8x8xbf16>
    %11 = vector.shape_cast %10 : vector<1x8x8xbf16> to vector<8x8xbf16>
    %12 = vector.shape_cast %9 : vector<8x8xbf16> to vector<1x8x8xbf16>
    tpu.vector_store %arg11[%c0_6, %c0_7, %c0_8], %12 {strides = array<i32>} : memref<4x8x8xbf16, #tpu.memory_space<vmem>>, vector<1x8x8xbf16>,
    %13 = vector.extract_strided_slice %8 {offsets = [0, 8], sizes = [8, 8], strides = [1, 1]} : vector<8x32xbf16> to vector<8x8xbf16>
    %c1 = arith.constant 1 : index
    %c0_9 = arith.constant 0 : index
    %c0_10 = arith.constant 0 : index
    %14 = vector.load %arg11[%c1, %c0_9, %c0_10] : memref<4x8x8xbf16, #tpu.memory_space<vmem>>, vector<1x8x8xbf16>
    %15 = vector.shape_cast %14 : vector<1x8x8xbf16> to vector<8x8xbf16>
    %16 = vector.shape_cast %13 : vector<8x8xbf16> to vector<1x8x8xbf16>
    tpu.vector_store %arg11[%c1, %c0_9, %c0_10], %16 {strides = array<i32>} : memref<4x8x8xbf16, #tpu.memory_space<vmem>>, vector<1x8x8xbf16>,
    %17 = vector.extract_strided_slice %8 {offsets = [0, 16], sizes = [8, 8], strides = [1, 1]} : vector<8x32xbf16> to vector<8x8xbf16>
    %c2 = arith.constant 2 : index
    %c0_11 = arith.constant 0 : index
    %c0_12 = arith.constant 0 : index
    %18 = vector.load %arg11[%c2, %c0_11, %c0_12] : memref<4x8x8xbf16, #tpu.memory_space<vmem>>, vector<1x8x8xbf16>
    %19 = vector.shape_cast %18 : vector<1x8x8xbf16> to vector<8x8xbf16>
    %20 = vector.shape_cast %17 : vector<8x8xbf16> to vector<1x8x8xbf16>
    tpu.vector_store %arg11[%c2, %c0_11, %c0_12], %20 {strides = array<i32>} : memref<4x8x8xbf16, #tpu.memory_space<vmem>>, vector<1x8x8xbf16>,
    %21 = vector.extract_strided_slice %8 {offsets = [0, 24], sizes = [8, 8], strides = [1, 1]} : vector<8x32xbf16> to vector<8x8xbf16>
    %c3 = arith.constant 3 : index
    %c0_13 = arith.constant 0 : index
    %c0_14 = arith.constant 0 : index
    %22 = vector.load %arg11[%c3, %c0_13, %c0_14] : memref<4x8x8xbf16, #tpu.memory_space<vmem>>, vector<1x8x8xbf16>
    %23 = vector.shape_cast %22 : vector<1x8x8xbf16> to vector<8x8xbf16>
    %24 = vector.shape_cast %21 : vector<8x8xbf16> to vector<1x8x8xbf16>
    tpu.vector_store %arg11[%c3, %c0_13, %c0_14], %24 {strides = array<i32>} : memref<4x8x8xbf16, #tpu.memory_space<vmem>>, vector<1x8x8xbf16>,
    %c0_15 = arith.constant 0 : index
    %c0_16 = arith.constant 0 : index
    %c0_17 = arith.constant 0 : index
    %25 = vector.load %arg11[%c0_15, %c0_16, %c0_17] : memref<4x8x8xbf16, #tpu.memory_space<vmem>>, vector<4x8x8xbf16>
    %c0_18 = arith.constant 0 : index
    %c0_19 = arith.constant 0 : index
    %c0_20 = arith.constant 0 : index
    %c0_21 = arith.constant 0 : index
    %26 = vector.load %arg3[%c0_18, %c0_19, %c0_20, %c0_21] : memref<1x4x8x8xbf16, #tpu.memory_space<vmem>>, vector<1x4x8x8xbf16>
    %27 = vector.shape_cast %26 : vector<1x4x8x8xbf16> to vector<4x8x8xbf16>
    "tpu.trace_start"() <{level = 10 : i32, message = "hqd,hdk->hqk"}> : () -> ()
    %cst_22 = arith.constant dense<0.000000e+00> : vector<4x8x8xf32>
    %28 = tpu.matmul %25, %27, %cst_22 {dimension_numbers = #tpu.dot_dimension_numbers<[2], [1], [1], [2], [0, 0, 0, 1, 1, 2], [0], [0]>} : vector<4x8x8xbf16>, vector<4x8x8xbf16>, vector<4x8x8xf32> -> vector<4x8x8xf32>
    "tpu.trace_stop"() : () -> ()
    %c0_23 = arith.constant 0 : index
    %c0_24 = arith.constant 0 : index
    %c0_25 = arith.constant 0 : index
    %c0_26 = arith.constant 0 : index
    %29 = vector.load %arg9[%c0_23, %c0_24, %c0_25, %c0_26] : memref<1x1x1x8xf32, #tpu.memory_space<vmem>>, vector<1x1x1x8xf32>
    %30 = vector.shape_cast %29 : vector<1x1x1x8xf32> to vector<1x1x8xf32>
    %31 = vector.broadcast %30 : vector<1x1x8xf32> to vector<4x8x8xf32>
    %32 = arith.addf %28, %31 : vector<4x8x8xf32>
    %cst_27 = arith.constant dense<0xFF800000> : vector<4x8xf32>
    %33 = vector.multi_reduction <maximumf>, %32, %cst_27 [2] : vector<4x8x8xf32> to vector<4x8xf32>
    %34 = vector.shape_cast %33 : vector<4x8xf32> to vector<4x8x1xf32>
    %35 = vector.broadcast %34 : vector<4x8x1xf32> to vector<4x8x8xf32>
    %36 = arith.subf %32, %35 : vector<4x8x8xf32>
    %37 = math.exp %36 : vector<4x8x8xf32>
    %cst_28 = arith.constant dense<0.000000e+00> : vector<4x8xf32>
    %38 = vector.multi_reduction <add>, %37, %cst_28 [2] : vector<4x8x8xf32> to vector<4x8xf32>
    %39 = vector.shape_cast %38 : vector<4x8xf32> to vector<4x8x1xf32>
    %40 = tpu.reciprocal %39 {approx = true} : vector<4x8x1xf32> -> vector<4x8x1xf32>
    %41 = vector.broadcast %40 : vector<4x8x1xf32> to vector<4x8x8xf32>
    %42 = arith.mulf %37, %41 : vector<4x8x8xf32>
    %43 = arith.truncf %42 : vector<4x8x8xf32> to vector<4x8x8xbf16>
    %c0_29 = arith.constant 0 : index
    %c0_30 = arith.constant 0 : index
    %c0_31 = arith.constant 0 : index
    %c0_32 = arith.constant 0 : index
    %44 = vector.load %arg4[%c0_29, %c0_30, %c0_31, %c0_32] : memref<1x4x8x8xbf16, #tpu.memory_space<vmem>>, vector<1x4x8x8xbf16>
    %45 = vector.shape_cast %44 : vector<1x4x8x8xbf16> to vector<4x8x8xbf16>
    "tpu.trace_start"() <{level = 10 : i32, message = "hqk,hkd->hqd"}> : () -> ()
    %cst_33 = arith.constant dense<0.000000e+00> : vector<4x8x8xf32>
    %46 = tpu.matmul %43, %45, %cst_33 {dimension_numbers = #tpu.dot_dimension_numbers<[2], [1], [1], [2], [0, 0, 0, 1, 1, 2], [0], [0]>} : vector<4x8x8xbf16>, vector<4x8x8xbf16>, vector<4x8x8xf32> -> vector<4x8x8xf32>
    "tpu.trace_stop"() : () -> ()
    %47 = vector.extract_strided_slice %46 {offsets = [0, 0, 0], sizes = [1, 8, 8], strides = [1, 1, 1]} : vector<4x8x8xf32> to vector<1x8x8xf32>
    %48 = vector.shape_cast %47 : vector<1x8x8xf32> to vector<8x8xf32>
    %49 = arith.truncf %48 : vector<8x8xf32> to vector<8x8xbf16>
    %c0_34 = arith.constant 0 : index
    %c0_35 = arith.constant 0 : index
    %50 = vector.load %arg12[%c0_34, %c0_35] : memref<8x32xbf16, #tpu.memory_space<vmem>>, vector<8x8xbf16>
    tpu.vector_store %arg12[%c0_34, %c0_35], %49 {strides = array<i32>} : memref<8x32xbf16, #tpu.memory_space<vmem>>, vector<8x8xbf16>,
    %51 = vector.extract_strided_slice %46 {offsets = [1, 0, 0], sizes = [1, 8, 8], strides = [1, 1, 1]} : vector<4x8x8xf32> to vector<1x8x8xf32>
    %52 = vector.shape_cast %51 : vector<1x8x8xf32> to vector<8x8xf32>
    %53 = arith.truncf %52 : vector<8x8xf32> to vector<8x8xbf16>
    %c0_36 = arith.constant 0 : index
    %c8 = arith.constant 8 : index
    %54 = vector.load %arg12[%c0_36, %c8] : memref<8x32xbf16, #tpu.memory_space<vmem>>, vector<8x8xbf16>
    tpu.vector_store %arg12[%c0_36, %c8], %53 {strides = array<i32>} : memref<8x32xbf16, #tpu.memory_space<vmem>>, vector<8x8xbf16>,
    %55 = vector.extract_strided_slice %46 {offsets = [2, 0, 0], sizes = [1, 8, 8], strides = [1, 1, 1]} : vector<4x8x8xf32> to vector<1x8x8xf32>
    %56 = vector.shape_cast %55 : vector<1x8x8xf32> to vector<8x8xf32>
    %57 = arith.truncf %56 : vector<8x8xf32> to vector<8x8xbf16>
    %c0_37 = arith.constant 0 : index
    %c16 = arith.constant 16 : index
    %58 = vector.load %arg12[%c0_37, %c16] : memref<8x32xbf16, #tpu.memory_space<vmem>>, vector<8x8xbf16>
    tpu.vector_store %arg12[%c0_37, %c16], %57 {strides = array<i32>} : memref<8x32xbf16, #tpu.memory_space<vmem>>, vector<8x8xbf16>,
    %59 = vector.extract_strided_slice %46 {offsets = [3, 0, 0], sizes = [1, 8, 8], strides = [1, 1, 1]} : vector<4x8x8xf32> to vector<1x8x8xf32>
    %60 = vector.shape_cast %59 : vector<1x8x8xf32> to vector<8x8xf32>
    %61 = arith.truncf %60 : vector<8x8xf32> to vector<8x8xbf16>
    %c0_38 = arith.constant 0 : index
    %c24 = arith.constant 24 : index
    %62 = vector.load %arg12[%c0_38, %c24] : memref<8x32xbf16, #tpu.memory_space<vmem>>, vector<8x8xbf16>
    tpu.vector_store %arg12[%c0_38, %c24], %61 {strides = array<i32>} : memref<8x32xbf16, #tpu.memory_space<vmem>>, vector<8x8xbf16>,
    %c0_39 = arith.constant 0 : index
    %c0_40 = arith.constant 0 : index
    %63 = vector.load %arg12[%c0_39, %c0_40] : memref<8x32xbf16, #tpu.memory_space<vmem>>, vector<8x32xbf16>
    %c0_41 = arith.constant 0 : index
    %c0_42 = arith.constant 0 : index
    %64 = vector.load %arg7[%c0_41, %c0_42] : memref<32x32xbf16, #tpu.memory_space<vmem>>, vector<32x32xbf16>
    %cst_43 = arith.constant dense<0.000000e+00> : vector<8x32xf32>
    %65 = tpu.matmul %63, %64, %cst_43 {dimension_numbers = #tpu.dot_dimension_numbers<[1], [0], [0], [1], [0, 0, 1, 1], [], []>} : vector<8x32xbf16>, vector<32x32xbf16>, vector<8x32xf32> -> vector<8x32xf32>
    %c0_44 = arith.constant 0 : index
    %c0_45 = arith.constant 0 : index
    %66 = vector.load %arg8[%c0_44, %c0_45] : memref<1x32xf32, #tpu.memory_space<vmem>>, vector<1x32xf32>
    %67 = vector.broadcast %66 : vector<1x32xf32> to vector<8x32xf32>
    %68 = arith.addf %65, %67 : vector<8x32xf32>
    %c0_46 = arith.constant 0 : index
    %c0_47 = arith.constant 0 : index
    %c0_48 = arith.constant 0 : index
    %69 = vector.load %arg10[%c0_46, %c0_47, %c0_48] : memref<1x8x32xf32, #tpu.memory_space<vmem>>, vector<1x8x32xf32>
    %70 = vector.shape_cast %69 : vector<1x8x32xf32> to vector<8x32xf32>
    %71 = vector.shape_cast %68 : vector<8x32xf32> to vector<1x8x32xf32>
    tpu.vector_store %arg10[%c0_46, %c0_47, %c0_48], %71 {strides = array<i32>} : memref<1x8x32xf32, #tpu.memory_space<vmem>>, vector<1x8x32xf32>,
    return
  }
  func.func @transform_0(%arg0: i32, %arg1: i32) -> (i32, i32, i32) {
    %c0_i32 = arith.constant 0 : i32
    %c0_i32_0 = arith.constant 0 : i32
    return %arg0, %arg1, %c0_i32 : i32, i32, i32
  }
  func.func @transform_1(%arg0: i32, %arg1: i32) -> (i32, i32, i32, i32) {
    %c0_i32 = arith.constant 0 : i32
    %c0_i32_0 = arith.constant 0 : i32
    %c0_i32_1 = arith.constant 0 : i32
    %c0_i32_2 = arith.constant 0 : i32
    return %arg0, %c0_i32, %c0_i32_0, %c0_i32_1 : i32, i32, i32, i32
  }
  func.func @transform_2(%arg0: i32, %arg1: i32) -> (i32, i32, i32, i32) {
    %c0_i32 = arith.constant 0 : i32
    %c0_i32_0 = arith.constant 0 : i32
    %c0_i32_1 = arith.constant 0 : i32
    %c0_i32_2 = arith.constant 0 : i32
    return %arg0, %c0_i32, %c0_i32_0, %c0_i32_1 : i32, i32, i32, i32
  }
  func.func @transform_3(%arg0: i32, %arg1: i32) -> (i32, i32) {
    %c0_i32 = arith.constant 0 : i32
    %c0_i32_0 = arith.constant 0 : i32
    %c0_i32_1 = arith.constant 0 : i32
    return %c0_i32, %c0_i32_0 : i32, i32
  }
  func.func @transform_4(%arg0: i32, %arg1: i32) -> (i32, i32) {
    %c0_i32 = arith.constant 0 : i32
    %c0_i32_0 = arith.constant 0 : i32
    %c0_i32_1 = arith.constant 0 : i32
    return %c0_i32, %c0_i32_0 : i32, i32
  }
  func.func @transform_5(%arg0: i32, %arg1: i32) -> (i32, i32) {
    %c0_i32 = arith.constant 0 : i32
    %c0_i32_0 = arith.constant 0 : i32
    %c0_i32_1 = arith.constant 0 : i32
    return %c0_i32, %c0_i32_0 : i32, i32
  }
  func.func @transform_6(%arg0: i32, %arg1: i32) -> (i32, i32) {
    %c0_i32 = arith.constant 0 : i32
    %c0_i32_0 = arith.constant 0 : i32
    %c0_i32_1 = arith.constant 0 : i32
    return %c0_i32, %c0_i32_0 : i32, i32
  }
  func.func @transform_7(%arg0: i32, %arg1: i32) -> (i32, i32, i32, i32) {
    %c0_i32 = arith.constant 0 : i32
    %c0_i32_0 = arith.constant 0 : i32
    %c0_i32_1 = arith.constant 0 : i32
    %c0_i32_2 = arith.constant 0 : i32
    return %arg0, %c0_i32, %c0_i32_0, %c0_i32_1 : i32, i32, i32, i32
  }
  func.func @transform_8(%arg0: i32, %arg1: i32) -> (i32, i32, i32) {
    %c0_i32 = arith.constant 0 : i32
    %c0_i32_0 = arith.constant 0 : i32
    return %arg0, %arg1, %c0_i32 : i32, i32, i32
  }
}

</mosaic_0001>

<bundles_post_ra>
// kernel: tpu_custom_call.1
= control target key start
LH: loop header
LB: loop body
LE: loop exit
PB: predicated region body
PF: predicated region fallthrough
CT: control target
= control target key end

     0   :  { %s1698_s0 = inlined_call_operand.hbm [shape: f32[2,8,32], index: 0, kind: input, shape index: {}]   ;;  %s1699_s1 = inlined_call_operand.hbm [shape: bf16[2,4,8,8], index: 1, kind: input, shape index: {}]   ;;  %s1700_s2 = inlined_call_operand.hbm [shape: bf16[2,4,8,8], index: 2, kind: input, shape index: {}]   ;;  %s1701_s3 = inlined_call_operand.hbm [shape: bf16[32,32], index: 3, kind: input, shape index: {}]   ;;  %s1702_s4 = inlined_call_operand.vmem [shape: f32[1,32], index: 4, kind: input, shape index: {}]   ;;  %s1703_s5 = inlined_call_operand.hbm [shape: bf16[32,32], index: 5, kind: input, shape index: {}]   ;;  %s1704_s6 = inlined_call_operand.vmem [shape: f32[1,32], index: 6, kind: input, shape index: {}]   ;;  %s1705_s7 = inlined_call_operand.vmem [shape: f32[2,1,1,8], index: 7, kind: input, shape index: {}]   ;;  %s1706_s8 = inlined_call_operand.hbm [shape: f32[2,8,32], index: 8, kind: output, shape index: {}]  }
   0x1   :  { %1720 = sst [smem:[#allocation25_spill]] %s1699_s1 }
   0x2   :  { %1721 = sst [smem:[#allocation26_spill]] %s1701_s3 }
   0x3   :  { %1722 = sst [smem:[#allocation27_spill]] %s1704_s6 }
   0x4   :  { %1723 = sst [smem:[#allocation28_spill]] %s1705_s7 }
   0x5   :  { %1724 = sst [smem:[#allocation29_spill]] %s1706_s8 }
   0x6   :  { %13 = vsyncpa [#allocation5], 0 }
   0x7   :  { %15 = vsyncpa [#allocation5 + $0x1], 0 }
   0x8   :  { %16 = vsyncpa [#allocation8], 0 }
   0x9   :  { %18 = vsyncpa [#allocation8 + $0x1], 0 }
   0xa   :  { %19 = vsyncpa [#allocation11], 0 }
   0xb   :  { %20 = vsyncpa [#allocation6], 0 }
   0xc   :  { %22 = vsyncpa [#allocation6 + $0x1], 0  ;;  %s1448_s27 = smov 0   ;;  %s1450_s28 = smov 0  }
   0xd   :  { %s1452_s29 = smov 0   ;;  %s1454_s30 = smov 0  }
   0xe   :  { %s1456_s9 = smov 0   ;;  %s1458_s10 = smov 0  }
   0xf LB: > { %1725 = sst [smem:[#allocation18_spill]] %s1371_s27  ;;  %s1479_s11 = sadd.s32 4294967295, %s1391_s10   ;;  %s1391_s10 = sphi %s1458_s10, %s28_s10   ;;  %s1387_s9 = sphi %s1456_s9, %s1756_s9   ;;  %s1383_s30 = sphi %s1454_s30, %s1755_s30   ;;  %s1379_s29 = sphi %s1452_s29, %s1751_s29   ;;  %s1375_s28 = sphi %s1450_s28, %s1754_s28   ;;  %s1371_s27 = sphi %s1448_s27, %s1753_s27  }
  0x10   : > { %1726 = sst [smem:[#allocation19_spill]] %s1379_s29  ;;  %s975_s12 = sadd.s32 4294967294, %s1391_s10  }
  0x11   : > { %1727 = sst [smem:[#allocation20_spill]] %s1391_s10  ;;  %p62_p0 = scmp.ne.s32.totalorder %s1375_s28, %s1371_s27 }
  0x12   : > { %p63_p1 = scmp.eq.s32.totalorder %s1479_s11, 0  ;;  %p250_p2 = scmp.eq.s32.totalorder %s1479_s11, 1 }
  0x13   : > { %p256_p3 = scmp.eq.s32.totalorder %s975_s12, 1  ;;  %p976_p5 = scmp.ge.s32.totalorder %s1391_s10, 1 }
  0x14   : > { %p1488_p4 = por %p63_p1, %p62_p0  ;;  %p263_p7 = scmp.lt.s32.totalorder %s1391_s10, 3 }
  0x15   : > { %p1493_p6 = por %p256_p3, %p62_p0  ;;  %s1731_s3 = sld [smem:[#allocation26_spill]] }
  0x16   : > { %p1501_p8 = pnand %p976_p5, %p263_p7  ;;  %s1393_s19 = smov [#allocation10]  }
  0x17   : > { %s1729_s14 = scalar_select %p1493_p6, 1, 0 }
  0x18   : > { %p1047_p9 = pneg %p1501_p8  ;;  %s276_s20 = sshll.u32 %s1393_s19, 4  ;;  %s277_s20 = int_to_ptr.vmem [resolvable:$true] %s276_s20 }
  0x19   : > { %1730 = sst [smem:[#allocation21_spill]] %s1729_s14  ;;  %s1707_s22 = smov 64  }
  0x1a   : > { %p1509_p10 = pnand %p1047_p9, %p63_p1  ;;  %s1709_s23 = smov 4  }
  0x1b   : > { %s274_s17 = sshll.u32 %s1731_s3, 4  ;;  %s40_s24 = sadd.s32 1, %s1387_s9  ;;  %s275_s17 = int_to_ptr.hbm [resolvable:$true] %s274_s17 }
  0x1c   : > { %1050 = dma.hbm_to_vmem [thread:$0]  (!%p1509_p10), %s275_s17, 256, %s277_s20, [#allocation11], %s1707_s22, %s1707_s22, %s1709_s23  }
  0x1d   : > { %p42_p12 = scmp.ge.s32.totalorder %s40_s24, 2  ;;  %s49_s25 = sadd.s32 1, %s1379_s29 }
  0x1e   : > { %p56_p13 = scmp.ne.s32.totalorder %s1379_s29, %s1375_s28  ;;  %p57_p0 = scmp.eq.s32.totalorder %s1391_s10, 0 }
  0x1f   : > { %s1758_s24 = smov (%p42_p12, %s40_s24), 0  ;;  %p1070_p7 = scmp.lt.s32.totalorder %s1391_s10, 2 }
  0x20   : > { %1734 = sst [smem:[#allocation22_spill]] %s1758_s24  ;;  %p58_p3 = por %p57_p0, %p56_p13 }
  0x21   : > { %p1528_p5 = por %p250_p2, %p56_p13  ;;  %s44_s12 = ssub.s32 %s1387_s9, %s1758_s24 }
  0x22   : > { %p47_p9 = scmp.eq.s32.totalorder %s44_s12, 0  ;;  %s1536_s15 = sand.u32 1, %s1379_s29  }
  0x23   : > { %s1735_s26 = scalar_select %p1528_p5, 1, 0 }
  0x24   : > { %p1538_p11 = pnand %p1070_p7, %p58_p3  ;;  %s330_s17 = sand.u32 1, %s1391_s10  }
  0x25   : > { %1736 = sst [smem:[#allocation23_spill]] %s1735_s26  ;;  %s982_s20 = sshll.u32 %s1536_s15, 4 }
  0x26   : > { %s1544_s19 = scalar_select %p47_p9, %s1379_s29, %s49_s25  }
  0x27   : > { %s1025_s22 = sshll.u32 %s1387_s9, 4  ;;  %s1739_s1 = sld [smem:[#allocation25_spill]] }
  0x28   : > { %1738 = sst [smem:[#allocation24_spill]] %s1544_s19  ;;  %s334_s27 = scalar_lea.vmem [#allocation7], %s982_s20 }
  0x29   : > { %s342_s12 = sshll.u32 %s334_s27, 4  ;;  %s331_s6 = scalar_lea.sflag [#allocation8], %s330_s17  ;;  %s343_s12 = int_to_ptr.vmem [resolvable:$true] %s342_s12 }
  0x2a   : > { %s1740_s26 = smov 4   ;;  %s1741_s10 = smov 64  }
  0x2b   : > { %s361_s29 = scalar_lea.hbm %s1700_s2, %s1025_s22  ;;  %s356_s23 = scalar_lea.vmem [#allocation9], %s982_s20 }
  0x2c   : > { %s362_s3 = sshll.u32 %s361_s29, 4  ;;  %s291_s17 = sshll.u32 %s1703_s5, 4  ;;  %s363_s3 = int_to_ptr.hbm [resolvable:$true] %s362_s3  ;;  %s292_s17 = int_to_ptr.hbm [resolvable:$true] %s291_s17 }
  0x2d   : > { %s339_s14 = scalar_lea.hbm %s1739_s1, %s1025_s22  ;;  %s1396_s8 = smov [#allocation12]  }
  0x2e   : > { %s340_s24 = sshll.u32 %s339_s14, 4  ;;  %s364_s14 = sshll.u32 %s356_s23, 4  ;;  %s341_s24 = int_to_ptr.hbm [resolvable:$true] %s340_s24  ;;  %s365_s14 = int_to_ptr.vmem [resolvable:$true] %s364_s14 }
  0x2f   : > { %1060 = dma.hbm_to_vmem [thread:$0]  (!%p1538_p11), %s341_s24, 256, %s343_s12, %s331_s6, %s1741_s10, %s1741_s10, %s1740_s26  }
  0x30   : > { %s293_s7 = sshll.u32 %s1396_s8, 4  ;;  %s980_s29 = sshll.u32 %s1536_s15, 3  ;;  %s294_s7 = int_to_ptr.vmem [resolvable:$true] %s293_s7 }
  0x31   : > { %1053 = dma.hbm_to_vmem [thread:$0]  (!%p1509_p10), %s292_s17, 256, %s294_s7, [#allocation11], %s1741_s10, %s1741_s10, %s1740_s26  }
  0x32   : > { %s981_s22 = sshll.u32 %s1387_s9, 3  ;;  %s314_s1 = scalar_lea.vmem [#allocation4], %s980_s29 }
  0x33   : > { %s319_s20 = scalar_lea.hbm %s1698_s0, %s981_s22  ;;  %s323_s25 = sshll.u32 %s314_s1, 4  ;;  %s324_s25 = int_to_ptr.vmem [resolvable:$true] %s323_s25 }
  0x34   : > { %s321_s12 = sshll.u32 %s319_s20, 4  ;;  %s311_s23 = scalar_lea.sflag [#allocation5], %s1536_s15  ;;  %s322_s12 = int_to_ptr.hbm [resolvable:$true] %s321_s12 }
  0x35   : > { %1057 = dma.hbm_to_vmem [thread:$0]  (!%p1538_p11), %s322_s12, 128, %s324_s25, %s311_s23  }
  0x36   : > { %1063 = dma.hbm_to_vmem [thread:$0]  (!%p1538_p11), %s363_s3, 256, %s365_s14, %s331_s6, %s1741_s10, %s1741_s10, %s1740_s26  }
  0x37   : > { %382 = sbr.rel (%p1501_p8) target bundleno = 1125 (0x465), region = 52  ;;  %s1583_s7 = sand.u32 (!%p1501_p8), 1, %s1375_s28  }
  0x38   : > { %s989_s8 = sshll.u32 (!%p1501_p8), %s1583_s7, 3  ;;  %s385_s21 = scalar_lea.sflag (!%p1501_p8), [#allocation5], %s1583_s7 }
  0x39   : > { %s388_s15 = scalar_lea.vmem (!%p1501_p8), [#allocation4], %s989_s8 }
  0x3c   : > { %1354 = dma.done.wait (%p1488_p4), %s385_s21, 128  }
  0x3d   : > { %1356 = vsyncadd (%p1488_p4), %s385_s21, 4294967168  ;;  %s394_s6 = sand.u32 1, %s1479_s11   ;;  %s990_s10 = sshll.u32 %s1583_s7, 4 }
  0x3e   : > { %s395_s18 = scalar_lea.sflag [#allocation8], %s394_s6  ;;  %s1595_s26 = scalar_lea.vmem [#allocation7], %s990_s10 }
  0x3f   : > { %1358 = dma.done.wait (%p1488_p4), %s395_s18, 512  }
  0x40   : > { %1360 = vsyncadd (%p1488_p4), %s395_s18, 4294966784  ;;  %s1601_s16 = scalar_lea.vmem [#allocation9], %s990_s10 }
  0x41   : > { %1362 = dma.done.wait (%p63_p1), [#allocation11], 512  }
  0x42   : > { %1364 = vsyncadd (%p63_p1), [#allocation11], 4294966784  ;;  %v1028_v0 = vld [vmem:[#allocation10 + $0x8] sm:$0xff]  ;;  %v1027_v1 = vld [vmem:[#allocation10] sm:$0xff]  ;;  %vm491_vm0 = vcmask 261120   ;;  %vm543_vm1 = vcmask 1043456  }
  0x43   : > { %501 = vmatpush.bf16.msra.mxu0 %v1028_v0  ;;  %v469_v2 = vld [vmem:[%s388_s15] sm:$0xff]  ;;  %v531_v4 = vld [vmem:[%s1595_s26] sm:$0xf]  ;;  %vm509_vm2 = vcmask 60416   ;;  %s1397_s3 = smov 104   ;;  %s1398_s14 = smov 120  }
  0x44   : > { %v470_v3 = vpack.c.bf16 %v469_v2, %v469_v2  ;;  %v545_v5 = vsel %vm543_vm1, %v531_v4, 0  ;;  %v1132_v6 = vld [vmem:[%s1702_s4] ss:$0 sm:$0xff]  ;;  %p465_p1 = scmp.lt.s32.totalorder %s1383_s30, 1  ;;  %s1742_s22 = sld [smem:[#allocation28_spill]]  ;;  %vm539_vm3 = vcmask 64512  }
  0x45   : > { %554 = vmatpush.bf16.msra.mxu1 %v545_v5  ;;  %s1399_s19 = smov 112   ;;  %v532_v12 = vld [vmem:[%s1595_s26 + $0x4] sm:$0xf]  ;;  %v534_v13 = vld [vmem:[%s1595_s26 + $0xc] sm:$0xf]  ;;  %s1400_s20 = smov 8  }
  0x46   : > { %s466_s27 = scalar_select %p465_p1, %s1383_s30, 1  ;;  %v564_v14 = vsel %vm543_vm1, %v532_v12, 0  ;;  %v602_v15 = vsel %vm543_vm1, %v534_v13, 0  ;;  %v533_v16 = vld [vmem:[%s1595_s26 + $0x8] sm:$0xf]  ;;  %vm752_vm4 = vcmask 126016  }
  0x47   : > { %502 = vmatpush.bf16.msra.mxu0 %v1027_v1  ;;  %573 = vmatpush.bf16.msra.mxu2 %v564_v14  ;;  %v583_v17 = vsel %vm543_vm1, %v533_v16, 0  ;;  %v666_v61 = vld [vmem:[%s1601_s16 + $0x4] sm:$0xf]  ;;  %v667_v63 = vld [vmem:[%s1601_s16 + $0x8] sm:$0xf]  ;;  %s1401_s12 = smov 16  }
  0x48   : > { %592 = vmatpush.bf16.msra.mxu3 %v583_v17  ;;  %v692_v62 = vsel %vm543_vm1, %v666_v61, 0  ;;  %v711_v0 = vsel %vm543_vm1, %v667_v63, 0  ;;  %v668_v1 = vld [vmem:[%s1601_s16 + $0xc] sm:$0xf]  ;;  %s1402_s1 = smov 24   ;;  %vm759_vm5 = vcmask 191616  }
  0x49   : > { %611 = vmatpush.bf16.msrb.mxu1 %v602_v15  ;;  %v730_v2 = vsel %vm543_vm1, %v668_v1, 0  ;;  %vm766_vm6 = vcmask 257216   ;;  %s1022_s25 = sshll.u32 %s1383_s30, 3  ;;  %s1743_s15 = sld [smem:[#allocation29_spill]] }
  0x4a   : > { %1003 = vmatmul.msk.bf16.vlgmr.msra.gmra.mxu0 %vm491_vm0, %v470_v3  ;;  %s467_s24 = scalar_lea.vmem %s1742_s22, %s466_s27  ;;  %v665_v3 = vld [vmem:[%s1601_s16] sm:$0xf]  ;;  %s1745_s16 = sld [smem:[#allocation27_spill]] }
  0x4b   : > { %v1133_v24 = vld [vmem:[%s467_s24] ss:$0 sm:$0xff]  ;;  %720 = vmatpush.bf16.msrb.mxu0 %v711_v0  ;;  %v673_v5 = vsel %vm543_vm1, %v665_v3, 0  ;;  %s464_s13 = scalar_lea.vmem [#allocation13], %s989_s8  ;;  %s807_s30 = scalar_lea.sflag [#allocation6], %s1583_s7 }
  0x4c   : > { %701 = vmatpush.bf16.msrb.mxu3 %v692_v62  ;;  %682 = vmatpush.bf16.msrb.mxu2 %v673_v5  ;;  %s820_s11 = sshll.u32 %s464_s13, 4  ;;  %s821_s11 = int_to_ptr.vmem [resolvable:$true] %s820_s11 }
  0x4f   : > { %s818_s10 = scalar_lea.hbm %s1743_s15, %s1022_s25  ;;  %s1321_s8 = scalar_lea.hbm %s1743_s15, 16 }
  0xc7   : > { %v504_v7 = vpop.f32.mrf.mxu0 }
  0xc8   : > { %v505_v8 = vadd.f32 %v1132_v6, %v504_v7 }
  0xca   : > { %v508_v9 = vpack.c.bf16 %v505_v8, %v505_v8 }
  0xcc   : > { %510 = vst.msk [vmem:[#allocation2] sm:$0xf] %vm509_vm2, %v508_v9  ;;  %522 = vrot.lane.b32.xlu1 %v508_v9, %s1397_s3  ;;  %512 = vrot.lane.b32.xlu0 %v508_v9, %s1398_s14  ;;  %s822_s3 = sshll.u32 %s818_s10, 4  ;;  %s823_s3 = int_to_ptr.hbm [resolvable:$true] %s822_s3 }
  0xcd   : > { %s1315_s14 = sshra.s32 %s823_s3, 4  ;;  %s1316_s14 = int_to_ptr.hbm [resolvable:$true] %s1315_s14 }
  0xce   : > { %s1317_s27 = scalar_lea.hbm %s1316_s14, 8  ;;  %p1322_p10 = scmp.lt.s32.totalorder %s1316_s14, %s1743_s15 }
  0xcf   : > { %v506_v10 = vpop.f32.mrf.mxu0  ;;  %p1318_p2 = scmp.ne.s32.totalorder %s1316_s14, %s1317_s27  ;;  %p1323_p11 = scmp.lt.s32.totalorder %s1321_s8, %s1317_s27 }
  0xd1   : > { %p1319_p4 = pnand %p1318_p2, %p1528_p5  ;;  %p1324_p12 = por %p1323_p11, %p1322_p10 }
  0xd3   : > { %v527_v11 = vld [vmem:[#allocation2] sm:$0xf]  ;;  %p1320_p8 = pneg %p1319_p4 }
  0xd4   : > { %517 = vrot.lane.b32.xlu0 %v508_v9, %s1399_s19  ;;  %1004 = vmatmul.msk.bf16.vlgmr.msra.gmra.mxu1 %vm539_vm3, %v527_v11 }
  0xd5   : > { %739 = vmatpush.bf16.msra.mxu1 %v730_v2  ;;  %p1325_p13 = pnand %p1324_p12, %p1320_p8 }
 0x13e   : > { %v523_v18 = vpop.permute.xlu1 %522  ;;  %v513_v19 = vpop.permute.xlu0 %512 }
 0x13f   : > { %526 = vst.msk [vmem:[#allocation2 + $0xc] sm:$0xf] %vm509_vm2, %v523_v18 }
 0x140   : > { %516 = vst.msk [vmem:[#allocation2 + $0x4] sm:$0xf] %vm509_vm2, %v513_v19 }
 0x146   : > { %v518_v20 = vpop.permute.xlu0 %517  ;;  %v530_v21 = vld [vmem:[#allocation2 + $0xc] sm:$0xf] }
 0x147   : > { %521 = vst.msk [vmem:[#allocation2 + $0x8] sm:$0xf] %vm509_vm2, %v518_v20  ;;  %v528_v22 = vld [vmem:[#allocation2 + $0x4] sm:$0xf]  ;;  %1007 = vmatmul.msk.bf16.vlgmr.msrb.gmra.mxu1 %vm539_vm3, %v530_v21 }
 0x148   : > { %1005 = vmatmul.msk.bf16.vlgmr.msra.gmra.mxu2 %vm539_vm3, %v528_v22 }
 0x14e   : > { %v529_v23 = vld [vmem:[#allocation2 + $0x8] sm:$0xf] }
 0x14f   : > { %1006 = vmatmul.msk.bf16.vlgmr.msra.gmra.mxu3 %vm539_vm3, %v529_v23 }
 0x151   : > { %v556_v25 = vpop.f32.mrf.mxu1 }
 0x152   : > { %v557_v26 = vadd.f32 %v1133_v24, %v556_v25 }
 0x154   : > { %v617_v27 = vsel %vm539_vm3, %v557_v26, -inf }
 0x155   : > { %618 = vmax.xlane.f32.xlu0 %v617_v27 }
 0x159   : > { %v558_v28 = vpop.f32.mrf.mxu1 }
 0x1c4   : > { %v613_v29 = vpop.f32.mrf.mxu1 }
 0x1c5   : > { %v614_v38 = vadd.f32 %v1133_v24, %v613_v29 }
 0x1c7   : > { %v626_v40 = vsel %vm539_vm3, %v614_v38, -inf }
 0x1c8   : > { %v619_v50 = vpop.xlane.xlu0 %618 }
 0x1c9   : > { %v629_v54 = vsub.f32 %v557_v26, %v619_v50 }
 0x1cb   : > { %v575_v30 = vpop.f32.mrf.mxu2  ;;  %v633_v56 = vmul.f32 1.442695, %v629_v54 }
 0x1cc   : > { %v576_v31 = vadd.f32 %v1133_v24, %v575_v30  ;;  %v615_v32 = vpop.f32.mrf.mxu1 }
 0x1ce   : > { %v620_v33 = vsel %vm539_vm3, %v576_v31, -inf }
 0x1cf   : > { %621 = vmax.xlane.f32.xlu1 %v620_v33  ;;  %v1030_v33 = vld [vmem:[#allocation12 + $0x8] sm:$0xff] }
 0x1d0   : > { %798 = vmatpush.bf16.msra.mxu2 %v1030_v33 }
 0x1d2   : > { %v594_v34 = vpop.f32.mrf.mxu3 }
 0x1d3   : > { %v577_v35 = vpop.f32.mrf.mxu2  ;;  %v595_v36 = vadd.f32 %v1133_v24, %v594_v34 }
 0x1d4   : > { %v1029_v35 = vld [vmem:[#allocation12] sm:$0xff] }
 0x1d5   : > { %v623_v37 = vsel %vm539_vm3, %v595_v36, -inf  ;;  %799 = vmatpush.bf16.msra.mxu2 %v1029_v35 }
 0x1d6   : > { %624 = vmax.xlane.f32.xlu2 %v623_v37 }
 0x1da   : > { %v596_v39 = vpop.f32.mrf.mxu3 }
 0x1db   : > { %v1134_v39 = vld [vmem:[%s1745_s16] ss:$0 sm:$0xff] }
 0x1de   : > { %627 = vmax.xlane.f32.xlu2 %v626_v40 }
 0x242   : > { %v622_v41 = vpop.xlane.xlu1 %621 }
 0x243   : > { %v630_v42 = vsub.f32 %v576_v31, %v622_v41 }
 0x245   : > { %v635_v43 = vmul.f32 1.442695, %v630_v42 }
 0x247   : > { %1135 = vpow2.f32 %v635_v43 }
 0x249   : > { %v625_v44 = vpop.xlane.xlu2 %624 }
 0x24a   : > { %v631_v45 = vsub.f32 %v595_v36, %v625_v44 }
 0x24c   : > { %v637_v46 = vmul.f32 1.442695, %v631_v45 }
 0x24d   : > { %v1136_v47 = vpop.eup %1135 }
 0x24e   : > { %1137 = vpow2.f32 %v637_v46  ;;  %v644_v48 = vsel %vm539_vm3, %v1136_v47, 0.0 }
 0x24f   : > { %645 = vadd.xlane.f32.xlu2 %v644_v48 }
 0x251   : > { %v628_v49 = vpop.xlane.xlu2 %627 }
 0x252   : > { %v632_v51 = vsub.f32 %v614_v38, %v628_v49 }
 0x254   : > { %v1138_v52 = vpop.eup %1137  ;;  %v639_v53 = vmul.f32 1.442695, %v632_v51 }
 0x255   : > { %v647_v55 = vsel %vm539_vm3, %v1138_v52, 0.0 }
 0x256   : > { %1139 = vpow2.f32 %v639_v53 }
 0x257   : > { %648 = vadd.xlane.f32.xlu2 %v647_v55  ;;  %1141 = vpow2.f32 %v633_v56 }
 0x25c   : > { %v1140_v57 = vpop.eup %1139 }
 0x25d   : > { %v650_v58 = vsel %vm539_vm3, %v1140_v57, 0.0  ;;  %v1142_v59 = vpop.eup %1141 }
 0x25e   : > { %v641_v60 = vsel %vm539_vm3, %v1142_v59, 0.0 }
 0x25f   : > { %651 = vadd.xlane.f32.xlu2 %v650_v58 }
 0x267   : > { %642 = vadd.xlane.f32.xlu2 %v641_v60 }
 0x2c2   : > { %v646_v4 = vpop.xlane.xlu2 %645 }
 0x2c3   : > { %1143 = vrcp.f32 %v646_v4 }
 0x2c9   : > { %v1144_v6 = vpop.eup %1143 }
 0x2ca   : > { %v658_v7 = vmul.f32 %v1144_v6, %v1136_v47  ;;  %v649_v8 = vpop.xlane.xlu2 %648 }
 0x2cb   : > { %1145 = vrcp.f32 %v649_v8 }
 0x2cc   : > { %v662_v9 = vpack.c.bf16 %v658_v7, %v658_v7 }
 0x2ce   : > { %1009 = vmatmul.msk.bf16.vlgmr.msrb.gmra.mxu3 %vm539_vm3, %v662_v9 }
 0x2d1   : > { %v1146_v10 = vpop.eup %1145 }
 0x2d2   : > { %v659_v11 = vmul.f32 %v1146_v10, %v1138_v52  ;;  %v652_v12 = vpop.xlane.xlu2 %651 }
 0x2d3   : > { %1147 = vrcp.f32 %v652_v12 }
 0x2d4   : > { %v663_v13 = vpack.c.bf16 %v659_v11, %v659_v11 }
 0x2d6   : > { %1010 = vmatmul.msk.bf16.vlgmr.msrb.gmra.mxu0 %vm539_vm3, %v663_v13 }
 0x2d9   : > { %v1148_v14 = vpop.eup %1147 }
 0x2da   : > { %v660_v15 = vmul.f32 %v1148_v14, %v1140_v57  ;;  %v643_v16 = vpop.xlane.xlu2 %642 }
 0x2db   : > { %1149 = vrcp.f32 %v643_v16 }
 0x2dc   : > { %v664_v17 = vpack.c.bf16 %v660_v15, %v660_v15 }
 0x2de   : > { %1011 = vmatmul.msk.bf16.vlgmr.msra.gmra.mxu1 %vm539_vm3, %v664_v17 }
 0x2e1   : > { %v1150_v18 = vpop.eup %1149 }
 0x2e2   : > { %v657_v19 = vmul.f32 %v1150_v18, %v1142_v59 }
 0x2e4   : > { %v661_v20 = vpack.c.bf16 %v657_v19, %v657_v19 }
 0x2e6   : > { %1008 = vmatmul.msk.bf16.vlgmr.msrb.gmra.mxu2 %vm539_vm3, %v661_v20 }
 0x351   : > { %v703_v21 = vpop.f32.mrf.mxu3 }
 0x352   : > { %v747_v22 = vpack.c.bf16 %v703_v21, %v703_v21 }
 0x353   : > { %v722_v23 = vpop.f32.mrf.mxu0 }
 0x354   : > { %v754_v24 = vpack.c.bf16 %v722_v23, %v722_v23  ;;  %749 = vrot.lane.b32.xlu2 %v747_v22, %s1400_s20 }
 0x356   : > { %756 = vrot.lane.b32.xlu1 %v754_v24, %s1401_s12 }
 0x359   : > { %v705_v25 = vpop.f32.mrf.mxu3 }
 0x35b   : > { %v724_v26 = vpop.f32.mrf.mxu0  ;;  %v741_v27 = vpop.f32.mrf.mxu1 }
 0x35c   : > { %v761_v28 = vpack.c.bf16 %v741_v27, %v741_v27 }
 0x35e   : > { %763 = vrot.lane.b32.xlu0 %v761_v28, %s1402_s1 }
 0x363   : > { %v743_v29 = vpop.f32.mrf.mxu1 }
 0x369   : > { %v684_v30 = vpop.f32.mrf.mxu2 }
 0x36a   : > { %v745_v31 = vpack.c.bf16 %v684_v30, %v684_v30 }
 0x36c   : > { %746 = vst.msk [vmem:[#allocation3] sm:$0xf] %vm509_vm2, %v745_v31 }
 0x371   : > { %v686_v32 = vpop.f32.mrf.mxu2 }
 0x3ae   : > { %v750_v34 = vpop.permute.xlu2 %749 }
 0x3af   : > { %753 = vst.msk [vmem:[#allocation3] sm:$0xf] %vm752_vm4, %v750_v34 }
 0x3c8   : > { %v757_v36 = vpop.permute.xlu1 %756 }
 0x3c9   : > { %760 = vst.msk [vmem:[#allocation3] sm:$0xf] %vm759_vm5, %v757_v36 }
 0x3d0   : > { %v764_v37 = vpop.permute.xlu0 %763 }
 0x3d1   : > { %767 = vst.msk [vmem:[#allocation3] sm:$0xf] %vm766_vm6, %v764_v37 }
 0x3d8   : > { %v768_v38 = vld [vmem:[#allocation3] sm:$0xf] }
 0x3d9   : > { %1020 = vmatmul.msk.bf16.vlgmr.msra.gmra.mxu2 %vm491_vm0, %v768_v38 }
 0x45c   : > { %v801_v40 = vpop.f32.mrf.mxu2 }
 0x45d   : > { %v802_v41 = vadd.f32 %v1134_v39, %v801_v40 }
 0x45f   : > { %805 = vst.msk [vmem:[%s464_s13] sm:$0xff] %vm491_vm0, %v802_v41 }
 0x460   : > { %1328 = shalt.err (!%p1325_p13)
}
 0x461   : > { %1045 = dma.vmem_to_hbm [thread:$0]  (%p1528_p5), %s821_s11, 128, %s823_s3, %s807_s30  }
 0x464   : > { %v803_v42 = vpop.f32.mrf.mxu2 }
 0x465 PF: > { %s1746_s7 = sld [smem:[#allocation18_spill]] }
 0x466   : > { %s1748_s20 = sld [smem:[#allocation20_spill]] }
 0x46b   : > { %s834_s12 = sand.u32 1, %s1746_s7  }
 0x46c   : > { %p1749_p0 = scmp.ge.s32.totalorder %s1748_s20, 2  ;;  %s835_s1 = scalar_lea.sflag [#allocation6], %s834_s12 }
 0x46e   : > { %p1065_p3 = pnand %p1749_p0, %p1493_p6 }
 0x470   : > { %p1066_p7 = pneg %p1065_p3 }
 0x472   : > { %1366 = dma.done.wait (%p1066_p7), %s835_s1, 128  }
 0x473   : > { %1368 = vsyncadd (%p1066_p7), %s835_s1, 4294967168  ;;  %s28_s10 = sadd.s32 1, %s1748_s20   ;;  %s1750_s25 = sld [smem:[#allocation19_spill]] }
 0x474   : > { %p25_p9 = scmp.ge.s32.totalorder %s28_s10, 4   ;;  %s1751_s29 = sld [smem:[#allocation24_spill]] }
 0x475   : > { %s1752_s23 = sld [smem:[#allocation22_spill]]  ;;  %s1753_s27 = smov %s1375_s28 }
 0x476   : > { %s1755_s30 = smov %s1387_s9 }
 0x477   :  { %27 = sbr.rel (!%p25_p9) target bundleno = 15 (0xf), region = 135 }
 0x479   : > { %s1754_s28 = smov %s1750_s25 }
 0x47b   : > { %s1756_s9 = smov %s1752_s23 }
 0x47c   :  { %841 = vsyncpa [#allocation5], 1 }
 0x47d   :  { %843 = vsyncpa [#allocation5 + $0x1], 1 }
 0x47e   :  { %844 = vsyncpa [#allocation8], 1 }
 0x47f   :  { %846 = vsyncpa [#allocation8 + $0x1], 1 }
 0x480   :  { %847 = vsyncpa [#allocation11], 1 }
 0x481   :  { %848 = vsyncpa [#allocation6], 1 }
 0x482   :  { %850 = vsyncpa [#allocation6 + $0x1], 1 }

</bundles_post_ra>
